<compile_context>
chip_gen: v5e
topology: v5e:2x2
jax: 0.10.0
libtpu: 0.0.40
codegen_flags: <defaults>
</compile_context>

<pallas_src>
import functools

import jax
import jax.numpy as jnp
from jax import lax
from jax.experimental import pallas as pl
from jax.experimental.pallas import tpu as pltpu

_LANE = 128
_MAX_CHUNKS = 64        # lane groups per input block (bounds unrolled code)
_MAX_SUB_ROWS = 128     # rows per in-vreg accumulator (<= 16 f32 vregs)


def _round_up(v, m):
    return ((v + m - 1) // m) * m


def _vmem_capacity_bytes():
    try:
        info = pltpu.get_tpu_info()
        cap = getattr(info, "vmem_capacity_bytes", None)
        if cap:
            return int(cap)
    except Exception:
        pass
    return 64 << 20  # conservative default (v7x-sized VMEM)


# --------------------------------------------------------------------------
# Kernel 1: streaming spatial partial sums.
# --------------------------------------------------------------------------
def _spatial_partial_sum_kernel(x_ref, o_ref, *, ts, nk_per_part, num_k,
                                s_total, sub_rows):
    """o[0, r, l] += sum_g x_block[r, g*128 + l] over the valid spatial extent."""
    kp = pl.program_id(1)
    k = pl.program_id(2)
    kg = kp * nk_per_part + k          # global block index along S

    @pl.when(k == 0)
    def _init():
        o_ref[...] = jnp.zeros_like(o_ref)

    tr = o_ref.shape[1]
    full_chunks = ts // _LANE
    tail_cols = s_total - (num_k - 1) * ts     # valid columns in the last block
    tail_full = tail_cols // _LANE
    tail_rem = tail_cols % _LANE

    def accum_rows(r0, n_chunks, rem):
        acc = jnp.zeros((sub_rows, _LANE), jnp.float32)
        for c in range(n_chunks):
            acc = acc + x_ref[pl.ds(r0, sub_rows),
                              c * _LANE:(c + 1) * _LANE].astype(jnp.float32)
        if rem:
            # Statically-masked partial lane group; the *select* (not a
            # multiply) drops the undefined padded region of the tail block.
            col = lax.broadcasted_iota(jnp.int32, (sub_rows, _LANE), 1)
            chunk = x_ref[pl.ds(r0, sub_rows),
                          n_chunks * _LANE:(n_chunks + 1) * _LANE]
            acc = acc + jnp.where(col < rem, chunk.astype(jnp.float32), 0.0)
        o_ref[0, pl.ds(r0, sub_rows), :] += acc

    def accum_block(n_chunks, rem):
        n_sub = tr // sub_rows
        if n_sub == 1:
            accum_rows(0, n_chunks, rem)
        else:
            def row_body(j, carry):
                accum_rows(pl.multiple_of(j * sub_rows, sub_rows),
                           n_chunks, rem)
                return carry
            lax.fori_loop(0, n_sub, row_body, 0)

    if num_k == 1:
        accum_block(tail_full, tail_rem)
    elif tail_full == full_chunks and tail_rem == 0:
        accum_block(full_chunks, 0)           # S divides TS: no tail anywhere
    else:
        @pl.when(kg < num_k - 1)
        def _full():
            accum_block(full_chunks, 0)       # unmasked fast path

        @pl.when(kg == num_k - 1)
        def _tail():
            accum_block(tail_full, tail_rem)  # only the global last block


# --------------------------------------------------------------------------
# Kernel 2: selection head, fed the lane-partial sums directly.
# --------------------------------------------------------------------------
def _head_kernel(part_ref, w1_ref, w2_ref, o_ref, *, B, M, C, KP, inv_s, eps):
    MC = M * C
    R = B * MC

    # Sum the reduction-axis partitions (KP is 1 or 2; leading-dim indexing).
    p = part_ref[0]
    for kk in range(1, KP):
        p = p + part_ref[kk]                                   # (R, 128)

    # Finish the 128-lane spatial sum + 1/S scale (XLU reduce, keepdims).
    row_mean = jnp.sum(p, axis=1, keepdims=True) * inv_s       # (R, 1)

    # Regroup the R = B*M*C row means into a (B, M*C) matrix with an exact
    # one-hot MXU matmul (no in-kernel reshape / relayout needed).
    r_i = lax.broadcasted_iota(jnp.int32, (R, MC), 0)
    l_i = lax.broadcasted_iota(jnp.int32, (R, MC), 1)
    scatter = jnp.where(l_i == r_i % MC, row_mean, 0.0)        # (R, MC)
    b_i = lax.broadcasted_iota(jnp.int32, (B, R), 0)
    rr_i = lax.broadcasted_iota(jnp.int32, (B, R), 1)
    gather = jnp.where(b_i == rr_i // MC, 1.0, 0.0)            # (B, R)
    pooled = jnp.dot(gather, scatter,
                     preferred_element_type=jnp.float32)       # (B, M*C)

    parts = [pooled[:, m * C:(m + 1) * C] for m in range(M)]   # each (B, C)
    x_s = parts[0]
    for m in range(1, M):
        x_s = x_s + parts[m]                                   # sum over M

    # fc1 + ReLU  (contract on C; MXU handles the transposed weight natively).
    w1 = w1_ref[...].astype(jnp.float32)                       # (d, C)
    x_z = jnp.einsum('bc,dc->bd', x_s, w1,
                     preferred_element_type=jnp.float32)
    x_z = jnp.maximum(x_z, 0.0)                                # (B, d)

    # fc2 as one wide MXU pass -> (B, M*C)
    w2 = w2_ref[...].astype(jnp.float32)                       # (M*C, d)
    logits = jnp.einsum('bd,ed->be', x_z, w2,
                        preferred_element_type=jnp.float32)

    lgs = [logits[:, m * C:(m + 1) * C] for m in range(M)]     # each (B, C)
    mx = lgs[0]
    for m in range(1, M):
        mx = jnp.maximum(mx, lgs[m])
    exps = [jnp.exp(l - mx) for l in lgs]
    den = exps[0]
    for m in range(1, M):
        den = den + exps[m]
    inv_den = pl.reciprocal(den, approx=True)
    inv_den = inv_den * (2.0 - den * inv_den)    # Newton step -> f32 accurate

    style = exps[0] * parts[0]
    for m in range(1, M):
        style = style + exps[m] * parts[m]
    style = style * inv_den                                    # (B, C)

    # L2 normalize.  NOTE: +eps under the rsqrt (reference divides by the raw
    # norm); only an exactly-zero style vector differs (NaN vs 0).
    nrm2 = jnp.sum(style * style, axis=1, keepdims=True) + eps
    inv_nrm = lax.rsqrt(nrm2)
    inv_nrm = inv_nrm * (1.5 - 0.5 * nrm2 * inv_nrm * inv_nrm)  # Newton step
    o_ref[...] = style * inv_nrm


# --------------------------------------------------------------------------
# Wrapper.
# --------------------------------------------------------------------------
def selected_volume_style(x, w1, w2, *, in_channels, M):
    """x: (B, M*C, H, W, D); w1: (d, C) fc1 weight; w2: (M*C, d) fc2 weight."""
    B, Ctot, H, W, D = x.shape
    C = in_channels
    assert Ctot == M * C
    S = H * W * D
    R = B * M * C
    d = w1.shape[0]

    # ---- Kernel 1 tiling: generation-aware, joint TR/TS selection ----------
    xf = x.reshape(R, S)
    itemsize = int(jnp.dtype(xf.dtype).itemsize)
    sub_mult = max(8, 32 // itemsize)        # dtype-native sublane multiple

    vmem_cap = _vmem_capacity_bytes()
    # ~16 MiB blocks on 128 MiB VMEM parts (v5e/v6e), ~12 MiB on 64 MiB (v7x).
    target_block_bytes = int(min(16 << 20,
                                 max(8 << 20, (vmem_cap - (16 << 20)) // 4)))

    lane_groups = int(pl.cdiv(S, _LANE))
    ts_groups_cap = int(min(lane_groups, _MAX_CHUNKS))

    # Rows: >=2 row blocks whenever R allows (keeps both v7x TCs streaming);
    # grown toward the byte target when the spatial tile is pinned at full S.
    two_block_tr = sub_mult if R <= sub_mult else _round_up(int(pl.cdiv(R, 2)),
                                                            sub_mult)
    rows_for_target = _round_up(
        max(sub_mult, target_block_bytes // (ts_groups_cap * _LANE * itemsize)),
        sub_mult)
    TR = int(min(two_block_tr, rows_for_target))
    if TR > _MAX_SUB_ROWS:
        TR = _round_up(TR, _MAX_SUB_ROWS)    # uniform 128-row sub-blocks
    sub_rows = min(TR, _MAX_SUB_ROWS)

    ts_groups = int(max(1, min(ts_groups_cap,
                               target_block_bytes // (TR * _LANE * itemsize))))
    TS = ts_groups * _LANE

    n_row_blocks = int(pl.cdiv(R, TR))
    num_k = int(pl.cdiv(S, TS))
    # Single row block -> split the reduction axis into 2 parallel partitions
    # so both v7x TensorCores stream HBM (summed in the head kernel).
    KP = 2 if (n_row_blocks == 1 and num_k >= 2 and num_k % 2 == 0) else 1
    nk_per_part = num_k // KP

    in_block_bytes = TR * TS * itemsize
    use_triple = (in_block_bytes <= (2 << 20)) and (nk_per_part >= 3)
    n_in_bufs = 3 if use_triple else 2
    vmem_need = n_in_bufs * in_block_bytes + 2 * TR * _LANE * 4 + (4 << 20)
    vmem_limit = int(min(vmem_cap, max(vmem_need, 32 << 20)))

    x_index = lambda i, kp, k: (i, kp * nk_per_part + k)
    if use_triple:
        x_spec = pl.BlockSpec((TR, TS), x_index, pipeline_mode=pl.Buffered(3))
    else:
        x_spec = pl.BlockSpec((TR, TS), x_index)

    partials = pl.pallas_call(
        functools.partial(_spatial_partial_sum_kernel, ts=TS,
                          nk_per_part=nk_per_part, num_k=num_k,
                          s_total=S, sub_rows=sub_rows),
        out_shape=jax.ShapeDtypeStruct((KP, R, _LANE), jnp.float32),
        grid_spec=pltpu.PrefetchScalarGridSpec(
            num_scalar_prefetch=0,
            grid=(n_row_blocks, KP, nk_per_part),
            in_specs=[x_spec],
            out_specs=pl.BlockSpec((1, TR, _LANE), lambda i, kp, k: (kp, i, 0)),
        ),
        compiler_params=pltpu.CompilerParams(
            dimension_semantics=("parallel", "parallel", "arbitrary"),
            vmem_limit_bytes=vmem_limit),
        cost_estimate=pl.CostEstimate(
            flops=int(R) * int(S),
            transcendentals=0,
            bytes_accessed=int(R * S * itemsize + KP * R * _LANE * 4)),
    )(xf)

    # ---- Kernel 2: selection head, fed the lane-partial sums directly ------
    out = pl.pallas_call(
        functools.partial(_head_kernel, B=B, M=M, C=C, KP=KP,
                          inv_s=float(1.0 / S), eps=1e-12),
        out_shape=jax.ShapeDtypeStruct((B, C), jnp.float32),
        in_specs=[
            pl.BlockSpec((KP, R, _LANE), lambda: (0, 0, 0)),
            pl.BlockSpec((d, C), lambda: (0, 0)),
            pl.BlockSpec((M * C, d), lambda: (0, 0)),
        ],
        out_specs=pl.BlockSpec((B, C), lambda: (0, 0)),
    )(partials, w1, w2)
    return out


def _reference(x, w1, w2, in_channels, M):
    """Pure-JAX transliteration of the PyTorch forward (for verification)."""
    B, _, H, W, D = x.shape
    C = in_channels
    xr = x.reshape(B, M, C, H, W, D)
    x_u = jnp.sum(xr, axis=1)
    x_s = jnp.mean(x_u, axis=(2, 3, 4))
    x_z = jnp.maximum(x_s @ w1.T, 0.0)
    sel = (x_z @ w2.T).reshape(B, M, C)
    sel = jax.nn.softmax(sel, axis=1)
    feats = jnp.sum(xr * sel[:, :, :, None, None, None], axis=1)
    style = jnp.mean(feats, axis=(2, 3, 4))
    return style / jnp.sqrt(jnp.sum(style ** 2, axis=1, keepdims=True))


if __name__ == "__main__":
    key = jax.random.PRNGKey(0)
    B, C, M = 2, 4, 2
    H = W = D = 8
    r_ratio, L = 16, 32
    d = max(int(C / r_ratio), L)  # = 32

    k1, k2, k3 = jax.random.split(key, 3)
    x = jax.random.normal(k1, (B, M * C, H, W, D), dtype=jnp.float32)
    # Deterministic synthetic weights (shapes from nn.Linear, bias=False).
    w1 = jax.random.normal(k2, (d, C), dtype=jnp.float32) * 0.1      # fc1
    w2 = jax.random.normal(k3, (C * M, d), dtype=jnp.float32) * 0.1  # fc2

    out = selected_volume_style(x, w1, w2, in_channels=C, M=M)
    out = jax.block_until_ready(out)

    ref = _reference(x, w1, w2, C, M)
    assert out.shape == (B, C)
    assert jnp.allclose(out, ref, rtol=5e-4, atol=1e-5), (
        f"max abs err = {jnp.max(jnp.abs(out - ref))}")
    print("KERNEL_OK")
</pallas_src>

<mosaic_0001>
module attributes {stable_mosaic.version = 11 : i64} {
  func.func @_spatial_partial_sum_kernel(%arg0: i32, %arg1: i32, %arg2: i32, %arg3: memref<8x512xf32, #tpu.memory_space<vmem>>, %arg4: memref<1x8x128xf32, #tpu.memory_space<vmem>>) attributes {dimension_semantics = [#tpu.dimension_semantics<parallel>, #tpu.dimension_semantics<parallel>, #tpu.dimension_semantics<arbitrary>], iteration_bounds = array<i64: 2, 1, 1>, scalar_prefetch = 0 : i64, scratch_operands = 0 : i64, tpu.core_type = #tpu.core_type<tc>, window_params = [{transform_indices = @transform_0, window_bounds = array<i64: 8, 512>}, {transform_indices = @transform_1, window_bounds = array<i64: 1, 8, 128>}]} {
    %c0_i32 = arith.constant 0 : i32
    %0 = arith.cmpi eq, %arg2, %c0_i32 : i32
    %1 = arith.extui %0 : i1 to i32
    %c0_i32_0 = arith.constant 0 : i32
    %2 = arith.cmpi ne, %1, %c0_i32_0 : i32
    scf.if %2 {
      %cst_11 = arith.constant 0.000000e+00 : f32
      %18 = vector.broadcast %cst_11 : f32 to vector<1x8x128xf32>
      %c0_12 = arith.constant 0 : index
      %c0_13 = arith.constant 0 : index
      %c0_14 = arith.constant 0 : index
      %19 = vector.load %arg4[%c0_12, %c0_13, %c0_14] : memref<1x8x128xf32, #tpu.memory_space<vmem>>, vector<1x8x128xf32>
      tpu.vector_store %arg4[%c0_12, %c0_13, %c0_14], %18 {strides = array<i32>} : memref<1x8x128xf32, #tpu.memory_space<vmem>>, vector<1x8x128xf32>,
    } else {
    }
    %cst = arith.constant 0.000000e+00 : f32
    %3 = vector.broadcast %cst : f32 to vector<8x128xf32>
    %c0 = arith.constant 0 : index
    %c0_1 = arith.constant 0 : index
    %4 = vector.load %arg3[%c0, %c0_1] : memref<8x512xf32, #tpu.memory_space<vmem>>, vector<8x128xf32>
    %5 = arith.addf %3, %4 : vector<8x128xf32>
    %c0_2 = arith.constant 0 : index
    %c128 = arith.constant 128 : index
    %6 = vector.load %arg3[%c0_2, %c128] : memref<8x512xf32, #tpu.memory_space<vmem>>, vector<8x128xf32>
    %7 = arith.addf %5, %6 : vector<8x128xf32>
    %c0_3 = arith.constant 0 : index
    %c256 = arith.constant 256 : index
    %8 = vector.load %arg3[%c0_3, %c256] : memref<8x512xf32, #tpu.memory_space<vmem>>, vector<8x128xf32>
    %9 = arith.addf %7, %8 : vector<8x128xf32>
    %c0_4 = arith.constant 0 : index
    %c384 = arith.constant 384 : index
    %10 = vector.load %arg3[%c0_4, %c384] : memref<8x512xf32, #tpu.memory_space<vmem>>, vector<8x128xf32>
    %11 = arith.addf %9, %10 : vector<8x128xf32>
    %c0_5 = arith.constant 0 : index
    %c0_6 = arith.constant 0 : index
    %c0_7 = arith.constant 0 : index
    %12 = vector.load %arg4[%c0_5, %c0_6, %c0_7] : memref<1x8x128xf32, #tpu.memory_space<vmem>>, vector<1x8x128xf32>
    %13 = vector.shape_cast %12 : vector<1x8x128xf32> to vector<8x128xf32>
    %14 = arith.addf %13, %11 : vector<8x128xf32>
    %c0_8 = arith.constant 0 : index
    %c0_9 = arith.constant 0 : index
    %c0_10 = arith.constant 0 : index
    %15 = vector.load %arg4[%c0_8, %c0_9, %c0_10] : memref<1x8x128xf32, #tpu.memory_space<vmem>>, vector<1x8x128xf32>
    %16 = vector.shape_cast %15 : vector<1x8x128xf32> to vector<8x128xf32>
    %17 = vector.shape_cast %14 : vector<8x128xf32> to vector<1x8x128xf32>
    tpu.vector_store %arg4[%c0_8, %c0_9, %c0_10], %17 {strides = array<i32>} : memref<1x8x128xf32, #tpu.memory_space<vmem>>, vector<1x8x128xf32>,
    return
  }
  func.func @transform_0(%arg0: i32, %arg1: i32, %arg2: i32) -> (i32, i32) {
    %c1_i32 = arith.constant 1 : i32
    %0 = arith.muli %arg1, %c1_i32 : i32
    %1 = arith.addi %0, %arg2 : i32
    %c0_i32 = arith.constant 0 : i32
    return %arg0, %1 : i32, i32
  }
  func.func @transform_1(%arg0: i32, %arg1: i32, %arg2: i32) -> (i32, i32, i32) {
    %c0_i32 = arith.constant 0 : i32
    %c0_i32_0 = arith.constant 0 : i32
    return %arg1, %arg0, %c0_i32 : i32, i32, i32
  }
}

</mosaic_0001>

<bundles_post_ra>
// kernel: tpu_custom_call.1
= control target key start
LH: loop header
LB: loop body
LE: loop exit
PB: predicated region body
PF: predicated region fallthrough
CT: control target
= control target key end

     0   :  { %6 = vsyncpa [#allocation3], 0  ;;  %s609_s0 = inlined_call_operand.hbm [shape: f32[16,512], index: 0, kind: input, shape index: {}]   ;;  %s610_s1 = inlined_call_operand.hbm [shape: f32[1,16,128], index: 1, kind: output, shape index: {}]  }
   0x1   :  { %8 = vsyncpa [#allocation3 + $0x1], 0 }
   0x2   :  { %9 = vsyncpa [#allocation4], 0 }
   0x3   :  { %11 = vsyncpa [#allocation4 + $0x1], 0  ;;  %s488_s6 = smov 0   ;;  %s490_s7 = smov 0  }
   0x4   :  { %s492_s8 = smov 0   ;;  %s494_s9 = smov 0  }
   0x5   :  { %s496_s10 = smov 0   ;;  %s498_s11 = smov 0  }
   0x6 LB: > { %s286_s12 = sadd.s32 4294967295, %s476_s11   ;;  %s287_s13 = sadd.s32 4294967294, %s476_s11   ;;  %s476_s11 = sphi %s498_s11, %s17_s11   ;;  %s472_s10 = sphi %s496_s10, %s619_s10   ;;  %s468_s9 = sphi %s494_s9, %s618_s9   ;;  %s464_s8 = sphi %s492_s8, %s617_s8   ;;  %s460_s7 = sphi %s490_s7, %s616_s7   ;;  %s456_s6 = sphi %s488_s6, %s615_s6  }
   0x7   : > { %s36_s14 = sadd.s32 1, %s472_s10  ;;  %s47_s15 = sadd.s32 1, %s464_s8 }
   0x8   : > { %p38_p0 = scmp.ge.s32.totalorder %s36_s14, 2  ;;  %p54_p1 = scmp.ne.s32.totalorder %s464_s8, %s460_s7 }
   0x9   : > { %p55_p2 = scmp.eq.s32.totalorder %s476_s11, 0  ;;  %p60_p3 = scmp.ne.s32.totalorder %s460_s7, %s456_s6 }
   0xa   : > { %s621_s14 = smov (%p38_p0, %s36_s14), 0  ;;  %p61_p5 = scmp.eq.s32.totalorder %s286_s12, 0 }
   0xb   : > { %p529_p4 = por %p55_p2, %p54_p1  ;;  %s42_s17 = ssub.s32 %s472_s10, %s621_s14 }
   0xc   : > { %p86_p6 = scmp.eq.s32.totalorder %s286_s12, 1  ;;  %p45_p7 = scmp.eq.s32.totalorder %s42_s17, 0 }
   0xd   : > { %p535_p8 = por %p61_p5, %p60_p3  ;;  %p92_p10 = scmp.eq.s32.totalorder %s287_s13, 1 }
   0xe   : > { %p539_p9 = por %p86_p6, %p54_p1  ;;  %p289_p12 = scmp.ge.s32.totalorder %s476_s11, 2 }
   0xf   : > { %s544_s20 = scalar_select %p45_p7, %s464_s8, %s47_s15  }
  0x10   : > { %p546_p11 = por %p92_p10, %p60_p3  ;;  %p313_p13 = scmp.lt.s32.totalorder %s476_s11, 2 }
  0x11   : > { %s112_s22 = sand.u32 1, %s464_s8   ;;  %s300_s24 = sshll.u32 %s472_s10, 5 }
  0x12   : > { %s290_s23 = sshll.u32 %s112_s22, 5  ;;  %s124_s27 = scalar_lea.hbm %s609_s0, %s300_s24 }
  0x13   : > { %s116_s28 = scalar_lea.vmem [#allocation2], %s290_s23  ;;  %s126_s30 = sshll.u32 %s124_s27, 4  ;;  %s127_s30 = int_to_ptr.hbm [resolvable:$true] %s126_s30 }
  0x14   : > { %s128_s29 = sshll.u32 %s116_s28, 4  ;;  %p306_p0 = pnand %p313_p13, %p529_p4  ;;  %s129_s29 = int_to_ptr.vmem [resolvable:$true] %s128_s29 }
  0x15   : > { %p293_p1 = scmp.ge.s32.totalorder %s476_s11, 1  ;;  %p133_p2 = scmp.lt.s32.totalorder %s476_s11, 3 }
  0x16   : > { %s113_s2 = scalar_lea.sflag [#allocation3], %s112_s22 }
  0x17   : > { %308 = dma.hbm_to_vmem [thread:$0]  (!%p306_p0), %s127_s30, 512, %s129_s29, %s113_s2  }
  0x18   : > { %p134_p3 = pnand %p293_p1, %p133_p2 }
  0x19   : > { %s562_s3 = sand.u32 (!%p134_p3), 1, %s460_s7  }
  0x1a   : > { %137 = sbr.rel (%p134_p3) target bundleno = 47 (0x2f), region = 24  ;;  %s294_s4 = sshll.u32 (!%p134_p3), %s562_s3, 5 }
  0x1b   : > { %s140_s5 = scalar_lea.sflag (!%p134_p3), [#allocation3], %s562_s3  ;;  %s143_s12 = scalar_lea.vmem (!%p134_p3), [#allocation2], %s294_s4 }
  0x1f   : > { %447 = dma.done.wait (%p535_p8), %s140_s5, 512  }
  0x20   : > { %449 = vsyncadd (%p535_p8), %s140_s5, 4294966784  ;;  %s295_s13 = sshll.u32 %s562_s3, 3  ;;  %s297_s15 = sshll.u32 %s468_s9, 3  ;;  %v170_v0 = vld [vmem:[%s143_s12] sm:$0xff]  ;;  %v172_v1 = vld [vmem:[%s143_s12 + $0x8] sm:$0xff] }
  0x21   : > { %v174_v2 = vld [vmem:[%s143_s12 + $0x10] sm:$0xff]  ;;  %v173_v3 = vadd.f32 %v172_v1, %v170_v0  ;;  %s194_s22 = scalar_lea.hbm %s610_s1, %s297_s15  ;;  %v176_v4 = vld [vmem:[%s143_s12 + $0x18] sm:$0xff]  ;;  %s162_s23 = scalar_lea.vmem [#allocation5], %s295_s13 }
  0x22   : > { %s196_s24 = sshll.u32 %s162_s23, 4  ;;  %s198_s18 = sshll.u32 %s194_s22, 4  ;;  %s197_s24 = int_to_ptr.vmem [resolvable:$true] %s196_s24  ;;  %s199_s18 = int_to_ptr.hbm [resolvable:$true] %s198_s18 }
  0x23   : > { %v175_v5 = vadd.f32 %v174_v2, %v173_v3  ;;  %s182_s25 = scalar_lea.sflag [#allocation4], %s562_s3  ;;  %s408_s9 = sshra.s32 %s199_s18, 4  ;;  %s409_s9 = int_to_ptr.hbm [resolvable:$true] %s408_s9 }
  0x24   : > { %s410_s26 = scalar_lea.hbm %s409_s9, 8  ;;  %s414_s29 = scalar_lea.hbm %s610_s1, 16 }
  0x25   : > { %v177_v6 = vadd.f32 %v176_v4, %v175_v5  ;;  %p411_p4 = scmp.ne.s32.totalorder %s409_s9, %s410_s26  ;;  %p415_p7 = scmp.lt.s32.totalorder %s409_s9, %s610_s1 }
  0x26   : > { %p416_p8 = scmp.lt.s32.totalorder %s414_s29, %s410_s26 }
  0x27   : > { %180 = vst [vmem:[%s162_s23] sm:$0xff] %v177_v6  ;;  %p412_p5 = pnand %p411_p4, %p539_p9 }
  0x28   : > { %p417_p10 = por %p416_p8, %p415_p7 }
  0x29   : > { %p413_p6 = pneg %p412_p5 }
  0x2b   : > { %p418_p13 = pnand %p417_p10, %p413_p6 }
  0x2d   : > { %421 = shalt.err (!%p418_p13)
}
  0x2e   : > { %303 = dma.vmem_to_hbm [thread:$0]  (%p539_p9), %s197_s24, 128, %s199_s18, %s182_s25  }
  0x2f PF: > { %s210_s3 = sand.u32 1, %s456_s6   ;;  %p310_p0 = pnand %p289_p12, %p546_p11 }
  0x30   : > { %s211_s4 = scalar_lea.sflag [#allocation4], %s210_s3 }
  0x31   : > { %p311_p1 = pneg %p310_p0 }
  0x33   : > { %451 = dma.done.wait (%p311_p1), %s211_s4, 128  }
  0x34   : > { %453 = vsyncadd (%p311_p1), %s211_s4, 4294967168  ;;  %s17_s11 = sadd.s32 1, %s476_s11   ;;  %s615_s6 = smov %s460_s7 }
  0x35   : > { %p14_p2 = scmp.ge.s32.totalorder %s17_s11, 4   ;;  %s616_s7 = smov %s464_s8 }
  0x36   : > { %s617_s8 = smov %s544_s20  ;;  %s618_s9 = smov %s472_s10 }
  0x37   : > { %s619_s10 = smov %s621_s14  ;;  %16 = sbr.rel (!%p14_p2) target bundleno = 6 (0x6), region = 73 }
  0x3c   :  { %217 = vsyncpa [#allocation3], 1 }
  0x3d   :  { %219 = vsyncpa [#allocation3 + $0x1], 1 }
  0x3e   :  { %220 = vsyncpa [#allocation4], 1 }
  0x3f   :  { %222 = vsyncpa [#allocation4 + $0x1], 1 }

</bundles_post_ra>
